<compile_context>
chip_gen: v5e
topology: v5e:2x2
jax: 0.10.0
libtpu: 0.0.40
codegen_flags: <defaults>
</compile_context>

<pallas_src>
import functools

import jax
import jax.numpy as jnp
from jax import lax
from jax.experimental import pallas as pl
from jax.experimental.pallas import tpu as pltpu


# ---------------------------------------------------------------------------
# 1) PACT / clipped-linear activation quantization (elementwise, mem-bound)
# ---------------------------------------------------------------------------

def _act_quant_kernel(sc_ref, x_ref, o_ref, *, dequantize, qmax):
    # sc_ref: SMEM f32[2] = [scale, clip_val] (hoisted scalar work)
    scale = sc_ref[0]
    clip_val = sc_ref[1]
    x = x_ref[...].astype(jnp.float32)
    out = jnp.minimum(jnp.maximum(x, 0.0), clip_val)
    q = jnp.floor(out / scale)                       # true divide (matches torch)
    q = jnp.minimum(jnp.maximum(q, 0.0), qmax)       # guard exact-boundary cases
    if dequantize:
        q = q * scale
    o_ref[...] = q.astype(o_ref.dtype)


def _plan_2d(n, itemsize):
    """Lane-dense (rows, width) view of a flat length-n array + ~1 MiB block rows."""
    width, pad = 128, (-n) % 128
    for w in (2048, 1024, 512, 256, 128):
        if n % w == 0:                 # avoid any pad/slice copy when possible
            width, pad = w, 0
            break
    rows = (n + pad) // width
    target_rows = max(8, (1 << 20) // (width * itemsize))   # ~1 MiB per block
    if rows <= target_rows:
        block_rows = rows              # single full-extent block (always legal)
    else:
        block_rows = target_rows - (target_rows % 8)
    return rows, width, block_rows, pad


def clipped_linear_quant(x, scale, clip_val, qmax, dequantize=False):
    """out = clamp(floor(clamp(x, 0, clip_val) / scale), 0, qmax) [* scale]."""
    orig_shape = x.shape
    orig_dtype = x.dtype
    flat = x.reshape(-1)               # keep native dtype through HBM
    n = flat.shape[0]
    rows, width, block_rows, pad = _plan_2d(n, flat.dtype.itemsize)
    if pad:
        flat = jnp.pad(flat, (0, pad))
    x2d = flat.reshape(rows, width)

    sc = jnp.stack([jnp.asarray(scale, jnp.float32).reshape(()),
                    jnp.asarray(clip_val, jnp.float32).reshape(())])

    kernel = functools.partial(_act_quant_kernel,
                               dequantize=bool(dequantize), qmax=float(qmax))
    out2d = pl.pallas_call(
        kernel,
        out_shape=jax.ShapeDtypeStruct((rows, width), orig_dtype),
        grid=(pl.cdiv(rows, block_rows),),
        in_specs=[
            pl.BlockSpec(memory_space=pltpu.SMEM),               # [scale, clip_val]
            pl.BlockSpec((block_rows, width), lambda i: (i, 0)),
        ],
        out_specs=pl.BlockSpec((block_rows, width), lambda i: (i, 0)),
        compiler_params=pltpu.CompilerParams(
            dimension_semantics=("parallel",),                   # megacore on v7x
        ),
    )(sc, x2d)

    out = out2d.reshape(-1)
    if pad:
        out = out[:n]
    # NOTE: like the torch module, the quantized code is returned as float even
    # when dequantize=False.
    return out.reshape(orig_shape)


def int_pact_activ(x, act_scale, abits, dequantize=False):
    act_scale = jnp.asarray(act_scale, jnp.float32).reshape(-1)
    qmax = 2.0 ** int(abits) - 1.0
    clip_val = qmax * act_scale[0]     # same float op as the torch module
    return clipped_linear_quant(x, act_scale[0], clip_val, qmax, dequantize)


# ---------------------------------------------------------------------------
# 2) conv2d + fused per-output-channel affine (im2col + MXU matmul)
# ---------------------------------------------------------------------------

def _matmul_affine_kernel(p_ref, w_ref, a_ref, b_ref, o_ref):
    acc = jnp.dot(p_ref[...], w_ref[...], preferred_element_type=jnp.float32)
    o_ref[...] = (acc * a_ref[...] + b_ref[...]).astype(o_ref.dtype)


def _im2col_nchw(x, kh, kw, stride, padding, dilation):
    n, c, h, w = x.shape
    sh, sw = stride
    ph, pw = padding
    dh, dw = dilation
    oh = (h + 2 * ph - dh * (kh - 1) - 1) // sh + 1
    ow = (w + 2 * pw - dw * (kw - 1) - 1) // sw + 1
    xp = jnp.pad(x, ((0, 0), (0, 0), (ph, ph), (pw, pw)))
    cols = []
    for i in range(kh):
        for j in range(kw):
            sl = lax.slice(
                xp,
                (0, 0, i * dh, j * dw),
                (n, c, i * dh + sh * (oh - 1) + 1, j * dw + sw * (ow - 1) + 1),
                (1, 1, sh, sw))
            cols.append(sl)                              # (n, c, oh, ow)
    pat = jnp.stack(cols, axis=2)                        # (n, c, kh*kw, oh, ow)
    pat = pat.transpose(0, 3, 4, 1, 2)                   # (n, oh, ow, c, kh*kw)
    pat = pat.reshape(n * oh * ow, c * kh * kw)          # K index = c*kh*kw + i*kw + j
    return pat, oh, ow


def _round_up(v, m):
    return ((v + m - 1) // m) * m


def conv2d_channel_affine(x, weight, a_coef, b_coef, *, stride, padding, dilation):
    """y[n,co] = a_coef[co] * conv2d(x, weight)[n,co] + b_coef[co]."""
    cout, cin, kh, kw = weight.shape
    pat, oh, ow = _im2col_nchw(x.astype(jnp.float32), kh, kw, stride, padding, dilation)
    m, k = pat.shape

    # Zero-pad contraction / output-channel dims so every block is (8,128)-aligned.
    kp = _round_up(k, 128)
    cp = _round_up(cout, 128)
    pat = jnp.pad(pat, ((0, 0), (0, kp - k)))
    wmat = weight.reshape(cout, k).T.astype(jnp.float32)           # (k, cout)
    wmat = jnp.pad(wmat, ((0, kp - k), (0, cp - cout)))
    a2 = jnp.pad(a_coef.astype(jnp.float32).reshape(1, cout), ((0, 0), (0, cp - cout)))
    b2 = jnp.pad(b_coef.astype(jnp.float32).reshape(1, cout), ((0, 0), (0, cp - cout)))

    tm = min(m, 512)
    if tm < m:
        tm -= tm % 8
    grid = (pl.cdiv(m, tm),)

    out = pl.pallas_call(
        _matmul_affine_kernel,
        out_shape=jax.ShapeDtypeStruct((m, cp), jnp.float32),
        grid=grid,
        in_specs=[
            pl.BlockSpec((tm, kp), lambda i: (i, 0)),
            pl.BlockSpec((kp, cp), lambda i: (0, 0)),
            pl.BlockSpec((1, cp), lambda i: (0, 0)),
            pl.BlockSpec((1, cp), lambda i: (0, 0)),
        ],
        out_specs=pl.BlockSpec((tm, cp), lambda i: (i, 0)),
        compiler_params=pltpu.CompilerParams(
            dimension_semantics=("parallel",),
        ),
    )(pat, wmat, a2, b2)

    out = out[:, :cout].reshape(x.shape[0], oh, ow, cout).transpose(0, 3, 1, 2)
    return out


# ---------------------------------------------------------------------------
# 3) Full IntMultiPrecActivConv2d forward
# ---------------------------------------------------------------------------

def int_multi_prec_activ_conv2d(x, weight, params):
    bits = params['wbits']
    cout = weight.shape[0]

    # --- activation quantization ---
    if params['first']:
        act_q = int_pact_activ(x, params['s_x'], params['abits'], dequantize=False)
    else:
        act_q = clipped_linear_quant(x, 1.0, 127.0, 127.0, dequantize=False)

    # --- fold per-bit rescale branches into one per-channel affine (A, B) ---
    sw = jax.nn.one_hot(jnp.argmax(params['alpha_weight'], axis=0),
                        len(bits), dtype=jnp.float32).T            # (n_bits, cout)
    a_coef = jnp.zeros((cout,), jnp.float32)
    b_coef = jnp.zeros((cout,), jnp.float32)
    for i, bit in enumerate(bits):
        if bit == 2:
            alpha = params['alpha'][2]
            bconst = params['b_8'][2] * 2.0 ** params['n_b'][2]
            shift = 2.0 ** params['n_sh'][2]
            a_coef = a_coef + sw[i] * (alpha / shift)
            b_coef = b_coef + sw[i] * (bconst / shift)
        elif bit == 8:
            alpha = params['alpha'][8]
            shift = 2.0 ** params['n_sh'][8]
            a_coef = a_coef + sw[i] * (alpha / shift)
            if params['b_16'][8] is not None:
                b_coef = b_coef + sw[i] * (alpha * params['b_16'][8] / shift)
        else:
            raise NotImplementedError(f"wbit {bit} not supported")

    if params.get('groups', 1) != 1:
        # TODO(synk): grouped convolutions are not lowered to the Pallas matmul path.
        raise NotImplementedError("groups != 1 not supported")

    return conv2d_channel_affine(act_q, weight, a_coef, b_coef,
                                 stride=params['stride'],
                                 padding=params['padding'],
                                 dilation=params['dilation'])


# ---------------------------------------------------------------------------
# Pure-JAX reference (faithful, per-bit, translation of the torch module)
# ---------------------------------------------------------------------------

def _reference_forward(x, weight, params):
    cout = weight.shape[0]
    bits = params['wbits']
    if params['first']:
        act_scale = params['s_x']
        clip_val = (2.0 ** params['abits'] - 1.0) * act_scale
        act_q = jnp.floor(jnp.clip(x, 0.0, clip_val[0]) / act_scale[0])
    else:
        act_q = jnp.floor(jnp.clip(x, 0.0, 127.0))
    sw = jax.nn.one_hot(jnp.argmax(params['alpha_weight'], axis=0),
                        len(bits), dtype=jnp.float32).T
    ph, pw = params['padding']
    total = 0.0
    for i, bit in enumerate(bits):
        eff_w = weight * sw[i].reshape(cout, 1, 1, 1)
        conv_out = lax.conv_general_dilated(
            act_q, eff_w, window_strides=params['stride'],
            padding=[(ph, ph), (pw, pw)], rhs_dilation=params['dilation'],
            dimension_numbers=('NCHW', 'OIHW', 'NCHW'),
            feature_group_count=params.get('groups', 1),
            precision=lax.Precision.HIGHEST)
        if bit == 2:
            alpha = params['alpha'][2].reshape(1, cout, 1, 1)
            bconst = (params['b_8'][2] * 2.0 ** params['n_b'][2]).reshape(1, cout, 1, 1)
            shift = (2.0 ** params['n_sh'][2]).reshape(1, cout, 1, 1)
            scale_out = (alpha * conv_out + bconst) / shift
        else:  # bit == 8
            if params['b_16'][8] is not None:
                conv_out = conv_out + (params['b_16'][8] * sw[i]).reshape(1, cout, 1, 1)
            scale_out = params['alpha'][8] * conv_out / 2.0 ** params['n_sh'][8]
        total = total + scale_out * sw[i].reshape(1, cout, 1, 1)
    return total


if __name__ == "__main__":
    key = jax.random.PRNGKey(0)
    kx, kw_, ka, kb, kc = jax.random.split(key, 5)

    n, cin, h, w = 2, 4, 16, 16
    cout, kh, kwid = 8, 3, 3
    bits = [2, 8]

    x = jax.random.normal(kx, (n, cin, h, w), dtype=jnp.float32) * 1.5
    # Weights on a 1/64 grid so MXU and XLA-reference convolutions are exact.
    weight = jax.random.randint(kw_, (cout, cin, kh, kwid), -32, 33).astype(jnp.float32) / 64.0

    params = {
        'first': True,
        'abits': 4,
        's_x': jnp.array([0.125], jnp.float32),
        'wbits': bits,
        'alpha_weight': jax.random.normal(ka, (len(bits), cout), dtype=jnp.float32),
        'alpha': {2: jnp.full((cout,), 0.5, jnp.float32),
                  8: jnp.asarray(0.25, jnp.float32)},
        'b_8': {2: jax.random.randint(kb, (cout,), -4, 5).astype(jnp.float32)},
        'n_b': {2: jnp.full((cout,), 2.0, jnp.float32)},
        'n_sh': {2: jnp.full((cout,), 3.0, jnp.float32),
                 8: jnp.asarray(2.0, jnp.float32)},
        'b_16': {8: jax.random.randint(kc, (cout,), -8, 9).astype(jnp.float32)},
        'stride': (1, 1),
        'padding': (1, 1),
        'dilation': (1, 1),
        'groups': 1,
    }

    y = int_multi_prec_activ_conv2d(x, weight, params)
    y = jax.block_until_ready(y)

    y_ref = _reference_forward(x, weight, params)
    assert y.shape == (n, cout, h, w), y.shape
    assert jnp.allclose(y, y_ref, atol=1e-4, rtol=1e-5), \
        float(jnp.max(jnp.abs(y - y_ref)))

    print("KERNEL_OK")
</pallas_src>

<mosaic_0001>
module attributes {stable_mosaic.version = 11 : i64} {
  func.func @_act_quant_kernel(%arg0: i32, %arg1: memref<2xf32, #tpu.memory_space<smem>>, %arg2: memref<1x2048xf32, #tpu.memory_space<vmem>>, %arg3: memref<1x2048xf32, #tpu.memory_space<vmem>>) attributes {dimension_semantics = [#tpu.dimension_semantics<parallel>], iteration_bounds = array<i64: 1>, scalar_prefetch = 0 : i64, scratch_operands = 0 : i64, tpu.core_type = #tpu.core_type<tc>, window_params = [{transform_indices = @transform_0, window_bounds = array<i64: 2>}, {transform_indices = @transform_1, window_bounds = array<i64: 1, 2048>}, {transform_indices = @transform_2, window_bounds = array<i64: 1, 2048>}]} {
    %c0 = arith.constant 0 : index
    %0 = memref.load %arg1[%c0] : memref<2xf32, #tpu.memory_space<smem>>
    %c1 = arith.constant 1 : index
    %1 = memref.load %arg1[%c1] : memref<2xf32, #tpu.memory_space<smem>>
    %c0_0 = arith.constant 0 : index
    %c0_1 = arith.constant 0 : index
    %2 = vector.load %arg2[%c0_0, %c0_1] : memref<1x2048xf32, #tpu.memory_space<vmem>>, vector<1x2048xf32>
    %cst = arith.constant 0.000000e+00 : f32
    %3 = vector.broadcast %cst : f32 to vector<1x2048xf32>
    %4 = arith.maximumf %2, %3 : vector<1x2048xf32>
    %5 = vector.broadcast %1 : f32 to vector<1x2048xf32>
    %6 = arith.minimumf %4, %5 : vector<1x2048xf32>
    %7 = vector.broadcast %0 : f32 to vector<1x2048xf32>
    %8 = arith.divf %6, %7 : vector<1x2048xf32>
    %9 = math.floor %8 : vector<1x2048xf32>
    %cst_2 = arith.constant 0.000000e+00 : f32
    %10 = vector.broadcast %cst_2 : f32 to vector<1x2048xf32>
    %11 = arith.maximumf %9, %10 : vector<1x2048xf32>
    %cst_3 = arith.constant 1.500000e+01 : f32
    %12 = vector.broadcast %cst_3 : f32 to vector<1x2048xf32>
    %13 = arith.minimumf %11, %12 : vector<1x2048xf32>
    %c0_4 = arith.constant 0 : index
    %c0_5 = arith.constant 0 : index
    %14 = vector.load %arg3[%c0_4, %c0_5] : memref<1x2048xf32, #tpu.memory_space<vmem>>, vector<1x2048xf32>
    tpu.vector_store %arg3[%c0_4, %c0_5], %13 {strides = array<i32>} : memref<1x2048xf32, #tpu.memory_space<vmem>>, vector<1x2048xf32>,
    return
  }
  func.func @transform_0(%arg0: i32) -> i32 {
    %c0_i32 = arith.constant 0 : i32
    %c0_i32_0 = arith.constant 0 : i32
    return %c0_i32 : i32
  }
  func.func @transform_1(%arg0: i32) -> (i32, i32) {
    %c0_i32 = arith.constant 0 : i32
    %c0_i32_0 = arith.constant 0 : i32
    return %arg0, %c0_i32 : i32, i32
  }
  func.func @transform_2(%arg0: i32) -> (i32, i32) {
    %c0_i32 = arith.constant 0 : i32
    %c0_i32_0 = arith.constant 0 : i32
    return %arg0, %c0_i32 : i32, i32
  }
}

</mosaic_0001>

<bundles_post_ra>
// kernel: tpu_custom_call.1
= control target key start
LH: loop header
LB: loop body
LE: loop exit
PB: predicated region body
PF: predicated region fallthrough
CT: control target
= control target key end

     0   :  { %7 = vsyncpa [#allocation5], 0  ;;  %s190_s0 = inlined_call_operand.hbm [shape: f32[2], index: 0, kind: input, shape index: {}]   ;;  %s191_s1 = inlined_call_operand.hbm [shape: f32[1,2048], index: 1, kind: input, shape index: {}]   ;;  %s192_s2 = inlined_call_operand.hbm [shape: f32[1,2048], index: 2, kind: output, shape index: {}]  }
   0x1   :  { %8 = vsyncpa [#allocation3], 0 }
   0x2   :  { %9 = vsyncpa [#allocation4], 0  ;;  %s15_s11 = sshll.u32 %s190_s0, 4  ;;  %s24_s14 = sshll.u32 %s191_s1, 4  ;;  %s16_s11 = int_to_ptr.hbm [resolvable:$true] %s15_s11  ;;  %s25_s14 = int_to_ptr.hbm [resolvable:$true] %s24_s14 }
   0x3   :  { %s163_s15 = smov [#allocation2]   ;;  %s164_s16 = smov [#allocation6]  }
   0x4   :  { %18 = dma.hbm_to_smem %s16_s11, 16, %s163_s15, [#allocation5]  }
   0x5   :  { %s26_s17 = sshll.u32 %s164_s16, 4  ;;  %s27_s17 = int_to_ptr.vmem [resolvable:$true] %s26_s17 }
   0x6   :  { %29 = dma.hbm_to_vmem [thread:$0]  %s25_s14, 256, %s27_s17, [#allocation3]  }
   0x7   :  { %157 = dma.done.wait [#allocation5], 16  }
   0x8   :  { %158 = vsyncadd [#allocation5], 4294967280 }
   0x9   :  { %159 = dma.done.wait [#allocation3], 256  }
   0xa   :  { %160 = vsyncadd [#allocation3], 4294967040 }
   0xb   :  { %38 = sfence }
   0xc   :  { %s39_s18 = sld [smem:[#allocation2]]  ;;  %v41_v1 = vld [vmem:[#allocation6] sm:$0xff]  ;;  %v42_v2 = vld [vmem:[#allocation6 + $0x8] sm:$0xff]  ;;  %s165_s1 = smov [#allocation7]  }
   0xd   :  { %s91_s0 = sld [smem:[#allocation2 + $0x1]]  ;;  %v43_v5 = vmax.f32 %v41_v1, 0.0  ;;  %v44_v7 = vmax.f32 %v42_v2, 0.0  ;;  %s78_s19 = sshll.u32 %s165_s1, 4  ;;  %s79_s19 = int_to_ptr.vmem [resolvable:$true] %s78_s19 }
   0xe   :  { %s80_s22 = sshll.u32 %s192_s2, 4  ;;  %s81_s22 = int_to_ptr.hbm [resolvable:$true] %s80_s22 }
  0x12   :  { %v48_v0 = vstv %s39_s18 }
  0x13   :  { %95 = vrcp.f32 %v48_v0  ;;  %v60_v6 = vand.u32 2147483648, %v48_v0  ;;  %vm54_vm0 = vweird.f32 %v48_v0  ;;  %v58_v9 = vand.u32 2147483647, %v48_v0 }
  0x14   :  { %v45_v10 = vstv %s91_s0 }
  0x15   :  { %v61_v12 = vor.u32 1.1754944e-38, %v60_v6  ;;  %v46_v13 = vmin.f32 %v43_v5, %v45_v10  ;;  %vm59_vm3 = vcmp.eq.f32.partialorder %v58_v9, 8.507059e+37  ;;  %v47_v15 = vmin.f32 %v44_v7, %v45_v10 }
  0x19   :  { %v96_v3 = vpop.eup %95 }
  0x1a   :  { %v50_v4 = vmul.f32 %v96_v3, %v48_v0  ;;  %vm55_vm1 = vweird.f32 %v96_v3 }
  0x1b   :  { %vm56_vm2 = vmor %vm54_vm0, %vm55_vm1 }
  0x1c   :  { %v51_v8 = vsub.f32 1.0, %v50_v4 }
  0x1e   :  { %v52_v11 = vmul.f32 %v96_v3, %v51_v8 }
  0x20   :  { %v53_v14 = vadd.f32 %v96_v3, %v52_v11 }
  0x22   :  { %v57_v16 = vsel %vm56_vm2, %v96_v3, %v53_v14 }
  0x23   :  { %v62_v17 = vsel %vm59_vm3, %v61_v12, %v57_v16 }
  0x24   :  { %v63_v18 = vmul.f32 %v62_v17, %v46_v13  ;;  %v64_v19 = vmul.f32 %v62_v17, %v47_v15 }
  0x26   :  { %v65_v20 = vfloor.f32 %v63_v18  ;;  %v66_v21 = vfloor.f32 %v64_v19 }
  0x28   :  { %v67_v22 = vmax.f32 %v65_v20, 0.0  ;;  %v68_v23 = vmax.f32 %v66_v21, 0.0 }
  0x2a   :  { %v69_v24 = vmin.f32 %v67_v22, 15.0  ;;  %v70_v25 = vmin.f32 %v68_v23, 15.0 }
  0x2c   :  { %71 = vst [vmem:[#allocation7] sm:$0xff] %v69_v24 }
  0x2d   :  { %72 = vst [vmem:[#allocation7 + $0x8] sm:$0xff] %v70_v25 }
  0x2e   :  { %83 = dma.vmem_to_hbm [thread:$0]  %s79_s19, 256, %s81_s22, [#allocation4]  }
  0x2f   :  { %161 = dma.done.wait [#allocation4], 256  }
  0x30   :  { %162 = vsyncadd [#allocation4], 4294967040 }
  0x31   :  { %88 = vsyncpa [#allocation3], 1 }
  0x32   :  { %89 = vsyncpa [#allocation4], 1 }
  0x33   :  { %90 = vsyncpa [#allocation5], 1 }

</bundles_post_ra>
